<compile_context>
chip_gen: v7x
topology: tpu7x:2x2x1
jax: 0.10.0
libtpu: 0.0.40
codegen_flags: <defaults>
</compile_context>

<pallas_src>
import jax
import jax.numpy as jnp
from jax.experimental import pallas as pl
from jax.experimental.pallas import tpu as pltpu


def _round_up(x, m):
    return (x + m - 1) // m * m


def _vmem_capacity_bytes():
    """Best-effort per-core VMEM capacity in bytes (with conservative fallbacks)."""
    try:
        cap = int(pltpu.get_tpu_info().vmem_capacity_bytes)
        if cap > 0:
            return cap
    except Exception:
        pass
    try:
        kind = jax.devices()[0].device_kind.lower()
    except Exception:
        kind = ""
    if "v5" in kind or "v6" in kind:
        return 128 << 20  # v5e / v6e: 128 MiB VMEM
    return 64 << 20       # v7x per-TensorCore (safe lower bound for unknown chips)


def subject_decoder_kernel(score_ref, feats_ref, w_ref, b_ref, out_ref):
    # score_ref: (TB, N, 1)        f32
    # feats_ref: (TB, N, D_in)     bf16 or f32 (storage dtype of sub_feats)
    # w_ref:     (D_in, D_out_pad) f32   (pre-transposed nn.Linear weight)
    # b_ref:     (1, D_out_pad)    f32
    # out_ref:   (TB, D_out_pad)   f32
    score = score_ref[...]                          # already f32
    feats = feats_ref[...].astype(jnp.float32)      # upcast after load (v5e-safe)

    # Weighted sum over the annotation axis on the VPU/XLU, f32 accumulation.
    fused = jnp.sum(score * feats, axis=1)          # (TB, D_in)

    # Linear layer on the MXU: y = fused @ W + b
    out_ref[...] = (
        jnp.dot(fused, w_ref[...], preferred_element_type=jnp.float32)
        + b_ref[...]
    )


@jax.jit
def subject_decoder(sub_feats, total_ann_score, w, b):
    """sub_feats: (B, N, D_in) [any float dtype; bf16 halves HBM traffic],
    total_ann_score: (B, N), w: (D_in, D_out) pre-transposed nn.Linear weight,
    b: (D_out,)  ->  (B, D_out) f32."""
    B, N, D_in = sub_feats.shape
    D_out = w.shape[1]
    D_out_pad = _round_up(D_out, 128)           # lane-dense output stores
    feats_bytes = jnp.dtype(sub_feats.dtype).itemsize

    # ---- Tiny parameter padding only (no batch padding of the big tensors).
    w_p = w.astype(jnp.float32)
    b_p = b.astype(jnp.float32)
    if D_out_pad != D_out:
        w_p = jnp.pad(w_p, ((0, 0), (0, D_out_pad - D_out)))
        b_p = jnp.pad(b_p, (0, D_out_pad - D_out))
    b_p = b_p.reshape(1, D_out_pad)

    # Score as (B, N, 1): lane-broadcast against feats inside the kernel.
    score3 = total_ann_score.astype(jnp.float32).reshape(B, N, 1)

    # ---- Tile size / VMEM budget derived from the real buffer sizes. -------
    N_sub = _round_up(N, 8)          # sublane padding inside VMEM
    Din_lane = _round_up(D_in, 128)  # lane padding inside VMEM

    cap = _vmem_capacity_bytes()
    budget = int(cap * 0.70)         # headroom for compiler-internal scratch

    # Resident W / b (constant index_map) — still double-buffered by default.
    fixed_bytes = 2 * (_round_up(D_in, 8) * D_out_pad * 4 + 8 * D_out_pad * 4)

    per_row_bytes = (
        2 * N_sub * Din_lane * feats_bytes   # feats tile, double-buffered
        + 2 * N_sub * 128 * 4                # score tile (lane-padded), 2x
        + 2 * D_out_pad * 4                  # output tile, double-buffered
        + N_sub * Din_lane * 4               # f32 score*feats product temp
        + Din_lane * 4                       # fused (tb, D_in) rows
    )

    tb = (budget - fixed_bytes) // max(per_row_bytes, 1)
    tb = max(8, (tb // 8) * 8)
    tb = min(tb, _round_up(B, 8))                       # never exceed the batch
    tb = min(tb, max(8, _round_up(pl.cdiv(B, 2), 8)))   # >=2 grid steps (v7x 2 TCs)

    needed = fixed_bytes + tb * per_row_bytes + (2 << 20)
    vmem_limit = int(min(max(needed, 16 << 20), int(cap * 0.9)))

    grid = (pl.cdiv(B, tb),)

    out_pad = pl.pallas_call(
        subject_decoder_kernel,
        out_shape=jax.ShapeDtypeStruct((B, D_out_pad), jnp.float32),
        grid=grid,
        in_specs=[
            pl.BlockSpec((tb, N, 1), lambda i: (i, 0, 0)),
            pl.BlockSpec((tb, N, D_in), lambda i: (i, 0, 0)),
            # Constant index maps -> weights stay resident in VMEM.
            pl.BlockSpec((D_in, D_out_pad), lambda i: (0, 0)),
            pl.BlockSpec((1, D_out_pad), lambda i: (0, 0)),
        ],
        out_specs=pl.BlockSpec((tb, D_out_pad), lambda i: (i, 0)),
        compiler_params=pltpu.CompilerParams(
            dimension_semantics=("parallel",),
            vmem_limit_bytes=vmem_limit,
        ),
    )(score3, sub_feats, w_p, b_p)

    return out_pad[:, :D_out]


def reference(sub_feats, total_ann_score, w, b):
    feats_f32 = sub_feats.astype(jnp.float32)
    score = total_ann_score.astype(jnp.float32)
    fused = jnp.sum(score[:, :, None] * feats_f32, axis=1)
    return jnp.dot(fused, w) + b


if __name__ == "__main__":
    # Small shapes consistent with the module:
    #   pool5_dim = 16, fc7_dim = 16 -> D_in = 32, jemb_dim = 32
    #   B = 2 sentences, N = 8 annotations
    B, N = 2, 8
    pool5_dim, fc7_dim, jemb_dim = 16, 16, 32
    D_in = pool5_dim + fc7_dim

    key = jax.random.PRNGKey(0)
    k_feats, k_score, k_w, k_b = jax.random.split(key, 4)

    # Features streamed as bf16 (halves HBM traffic); the reference sees the
    # same bf16-rounded values so parity stays tight.
    sub_feats = jax.random.normal(
        k_feats, (B, N, D_in), dtype=jnp.float32
    ).astype(jnp.bfloat16)
    total_ann_score = jax.nn.softmax(
        jax.random.normal(k_score, (B, N), dtype=jnp.float32), axis=-1
    )

    # nn.Linear(D_in, jemb_dim) parameters. PyTorch stores weight as (out, in);
    # we pass it pre-transposed as (in, out).
    w = jax.random.normal(k_w, (D_in, jemb_dim), dtype=jnp.float32) * 0.05
    bias = jax.random.normal(k_b, (jemb_dim,), dtype=jnp.float32) * 0.05

    out = jax.block_until_ready(subject_decoder(sub_feats, total_ann_score, w, bias))
    ref = reference(sub_feats, total_ann_score, w, bias)

    assert out.shape == (B, jemb_dim)
    # Tolerance covers bf16-streamed feats + MXU default f32 matmul precision.
    assert jnp.allclose(out, ref, atol=5e-3, rtol=5e-3), float(
        jnp.max(jnp.abs(out - ref))
    )

    print("KERNEL_OK")
</pallas_src>

<mosaic_0001>
module attributes {stable_mosaic.version = 11 : i64} {
  func.func @subject_decoder_kernel(%arg0: i32, %arg1: memref<8x8x1xf32, #tpu.memory_space<vmem>>, %arg2: memref<8x8x32xbf16, #tpu.memory_space<vmem>>, %arg3: memref<32x128xf32, #tpu.memory_space<vmem>>, %arg4: memref<1x128xf32, #tpu.memory_space<vmem>>, %arg5: memref<8x128xf32, #tpu.memory_space<vmem>>) attributes {dimension_semantics = [#tpu.dimension_semantics<parallel>], iteration_bounds = array<i64: 1>, scalar_prefetch = 0 : i64, scratch_operands = 0 : i64, tpu.core_type = #tpu.core_type<tc>, window_params = [{transform_indices = @transform_0, window_bounds = array<i64: 8, 8, 1>}, {transform_indices = @transform_1, window_bounds = array<i64: 8, 8, 32>}, {pipeline_mode = #tpu.pipeline_mode<synchronous>, transform_indices = @transform_2, window_bounds = array<i64: 32, 128>}, {pipeline_mode = #tpu.pipeline_mode<synchronous>, transform_indices = @transform_3, window_bounds = array<i64: 1, 128>}, {transform_indices = @transform_4, window_bounds = array<i64: 8, 128>}]} {
    %c0 = arith.constant 0 : index
    %c0_0 = arith.constant 0 : index
    %c0_1 = arith.constant 0 : index
    %0 = vector.load %arg1[%c0, %c0_0, %c0_1] : memref<8x8x1xf32, #tpu.memory_space<vmem>>, vector<8x8x1xf32>
    %c0_2 = arith.constant 0 : index
    %c0_3 = arith.constant 0 : index
    %c0_4 = arith.constant 0 : index
    %1 = vector.load %arg2[%c0_2, %c0_3, %c0_4] : memref<8x8x32xbf16, #tpu.memory_space<vmem>>, vector<8x8x32xbf16>
    %2 = arith.extf %1 : vector<8x8x32xbf16> to vector<8x8x32xf32>
    %3 = vector.broadcast %0 : vector<8x8x1xf32> to vector<8x8x32xf32>
    %4 = arith.mulf %3, %2 : vector<8x8x32xf32>
    %cst = arith.constant dense<0.000000e+00> : vector<8x32xf32>
    %5 = vector.multi_reduction <add>, %4, %cst [1] : vector<8x8x32xf32> to vector<8x32xf32>
    %c0_5 = arith.constant 0 : index
    %c0_6 = arith.constant 0 : index
    %6 = vector.load %arg3[%c0_5, %c0_6] : memref<32x128xf32, #tpu.memory_space<vmem>>, vector<32x128xf32>
    %cst_7 = arith.constant dense<0.000000e+00> : vector<8x128xf32>
    %7 = tpu.matmul %5, %6, %cst_7 {dimension_numbers = #tpu.dot_dimension_numbers<[1], [0], [0], [1], [0, 0, 1, 1], [], []>} : vector<8x32xf32>, vector<32x128xf32>, vector<8x128xf32> -> vector<8x128xf32>
    %c0_8 = arith.constant 0 : index
    %c0_9 = arith.constant 0 : index
    %8 = vector.load %arg4[%c0_8, %c0_9] : memref<1x128xf32, #tpu.memory_space<vmem>>, vector<1x128xf32>
    %9 = vector.broadcast %8 : vector<1x128xf32> to vector<8x128xf32>
    %10 = arith.addf %7, %9 : vector<8x128xf32>
    %c0_10 = arith.constant 0 : index
    %c0_11 = arith.constant 0 : index
    %11 = vector.load %arg5[%c0_10, %c0_11] : memref<8x128xf32, #tpu.memory_space<vmem>>, vector<8x128xf32>
    tpu.vector_store %arg5[%c0_10, %c0_11], %10 {strides = array<i32>} : memref<8x128xf32, #tpu.memory_space<vmem>>, vector<8x128xf32>,
    return
  }
  func.func @transform_0(%arg0: i32) -> (i32, i32, i32) {
    %c0_i32 = arith.constant 0 : i32
    %c0_i32_0 = arith.constant 0 : i32
    %c0_i32_1 = arith.constant 0 : i32
    return %arg0, %c0_i32, %c0_i32_0 : i32, i32, i32
  }
  func.func @transform_1(%arg0: i32) -> (i32, i32, i32) {
    %c0_i32 = arith.constant 0 : i32
    %c0_i32_0 = arith.constant 0 : i32
    %c0_i32_1 = arith.constant 0 : i32
    return %arg0, %c0_i32, %c0_i32_0 : i32, i32, i32
  }
  func.func @transform_2(%arg0: i32) -> (i32, i32) {
    %c0_i32 = arith.constant 0 : i32
    %c0_i32_0 = arith.constant 0 : i32
    %c0_i32_1 = arith.constant 0 : i32
    return %c0_i32, %c0_i32_0 : i32, i32
  }
  func.func @transform_3(%arg0: i32) -> (i32, i32) {
    %c0_i32 = arith.constant 0 : i32
    %c0_i32_0 = arith.constant 0 : i32
    %c0_i32_1 = arith.constant 0 : i32
    return %c0_i32, %c0_i32_0 : i32, i32
  }
  func.func @transform_4(%arg0: i32) -> (i32, i32) {
    %c0_i32 = arith.constant 0 : i32
    %c0_i32_0 = arith.constant 0 : i32
    return %arg0, %c0_i32 : i32, i32
  }
}

</mosaic_0001>

<bundles_post_ra>
// kernel: subject_decoder.1
= control target key start
LH: loop header
LB: loop body
LE: loop exit
PB: predicated region body
PF: predicated region fallthrough
CT: control target
= control target key end

     0   :  { %v345_v2 = vmov 0   ;;  %s449_s0 = inlined_call_operand.vmem [shape: f32[2,8,1], index: 0, kind: input, shape index: {}]   ;;  %s450_s1 = inlined_call_operand.vmem [shape: bf16[2,8,32], index: 1, kind: input, shape index: {}]   ;;  %s451_s2 = inlined_call_operand.vmem [shape: f32[32,128], index: 2, kind: input, shape index: {}]   ;;  %s452_s3 = inlined_call_operand.vmem [shape: f32[1,128], index: 3, kind: input, shape index: {}]   ;;  %s453_s4 = inlined_call_operand.hbm [shape: f32[2,128], index: 4, kind: output, shape index: {}]  }
   0x1   :  { %v20_v0 = vld [vmem:[%s449_s0 + $0x10] sm:$0xff]  ;;  %v18_v1 = vld [vmem:[%s449_s0] sm:$0xff]  ;;  %320 = vset.pattern.permute.xlu1 %v345_v2  ;;  %319 = vset.pattern.permute.xlu0 %v345_v2  ;;  %v21_v3 = vld [vmem:[%s449_s0 + $0x18] sm:$0xff] }
   0x2   :  { %54 = vperm.xlu1 %320, %v20_v0   ;;  %44 = vperm.xlu0 %319, %v18_v1   ;;  %v19_v4 = vld [vmem:[%s449_s0 + $0x8] sm:$0xff] }
   0x3   :  { %9 = vsyncpa [#allocation3], 0  ;;  %v23_v5 = vld [vmem:[%s449_s0 + $0x28] sm:$0xff]  ;;  %v22_v6 = vld [vmem:[%s449_s0 + $0x20] sm:$0xff]  ;;  %v346_v12 = vmov 0.0|0.0   ;;  %vm347_vm0 = vmmov 0  }
   0x4   :  { %v25_v7 = vld [vmem:[%s449_s0 + $0x38] sm:$0xff]  ;;  %v24_v8 = vld [vmem:[%s449_s0 + $0x30] sm:$0xff]  ;;  %v147_v9 = vld [vmem:[%s451_s2] sm:$0xff]  ;;  %306 = vmatprep.subr.bf16.mxu0 %v346_v12  ;;  %v348_v16 = vmov 0.0   ;;  %vm90_vm1 = vcmask 261120   ;;  %vm166_vm2 = vcmask 1041409  }
   0x5   :  { %v148_v10 = vld [vmem:[%s451_s2 + $0x8] sm:$0xff]  ;;  %v149_v13 = vld [vmem:[%s451_s2 + $0x10] sm:$0xff]  ;;  %v150_v14 = vld [vmem:[%s451_s2 + $0x18] sm:$0xff]  ;;  %303 = vmatprep.mubr.msk.f32.mxu0 %vm347_vm0, %v348_v16  ;;  %vm168_vm3 = vcmask 1042434   ;;  %vm170_vm4 = vcmask 1043459   ;;  %vm172_vm5 = vcmask 1044484  }
   0x6   :  { %59 = vperm.xlu1 %320, %v21_v3   ;;  %49 = vperm.xlu0 %319, %v19_v4   ;;  %v307_v11 = vpack.c.bf16 %v148_v10, %v147_v9  ;;  %v310_v15 = vpack.c.bf16 %v150_v14, %v149_v13  ;;  %v287_v17 = vld [vmem:[%s450_s1 + $0x8] sm:$0xff]   ;;  %v272_v18 = vld [vmem:[%s450_s1] sm:$0xff]   ;;  %v288_v27 = vld [vmem:[%s450_s1 + $0x10] sm:$0xff]   ;;  %vm174_vm6 = vcmask 1045509   ;;  %vm176_vm7 = vcmask 1046534  }
   0x7   :  { %v277_v19 = vunpack.c.l.bf16 %v287_v17  ;;  %v273_v20 = vunpack.c.l.bf16 %v272_v18  ;;  %v278_v25 = vunpack.c.h.bf16 %v287_v17  ;;  %v274_v26 = vunpack.c.h.bf16 %v272_v18  ;;  %v289_v40 = vld [vmem:[%s450_s1 + $0x18] sm:$0xff]  }
   0x8   :  { %308 = vmatpush3.bf16.msra.mxu0 %v307_v11  ;;  %v282_v36 = vunpack.c.h.bf16 %v288_v27  ;;  %v281_v37 = vunpack.c.l.bf16 %v288_v27  ;;  %v286_v51 = vunpack.c.h.bf16 %v289_v40  ;;  %v285_v52 = vunpack.c.l.bf16 %v289_v40 }
   0x9   :  { %309 = vmatprep.subr.bf16.mxu0 %v346_v12  ;;  %vm178_vm8 = vcmask 1047559  }
   0xa   :  { %69 = vperm.xlu1 %320, %v23_v5   ;;  %64 = vperm.xlu0 %319, %v22_v6  }
   0xc   :  { %311 = vmatpush3.bf16.msra.mxu0 %v310_v15 }
   0xe   :  { %79 = vperm.xlu1 %320, %v25_v7   ;;  %74 = vperm.xlu0 %319, %v24_v8  }
  0x81   :  { %v55_v21 = vpop.permute.xlu1 %54  ;;  %v45_v22 = vpop.permute.xlu0 %44 }
  0x82   :  { %v84_v23 = vmul.f32 %v277_v19, %v55_v21  ;;  %v82_v24 = vmul.f32 %v273_v20, %v45_v22 }
  0x84   :  { %v105_v28 = vsel %vm90_vm1, %v84_v23, 0.0  ;;  %v91_v29 = vsel %vm90_vm1, %v82_v24, 0.0 }
  0x85   :  { %v106_v30 = vrot.slane %v105_v28, 4  ;;  %v92_v31 = vrot.slane %v91_v29, 4  ;;  %v60_v32 = vpop.permute.xlu1 %59  ;;  %v50_v33 = vpop.permute.xlu0 %49 }
  0x86   :  { %v85_v34 = vmul.f32 %v278_v25, %v60_v32  ;;  %v83_v35 = vmul.f32 %v274_v26, %v50_v33 }
  0x87   :  { %v107_v38 = vadd.f32 %v106_v30, %v105_v28  ;;  %v93_v39 = vadd.f32 %v92_v31, %v91_v29 }
  0x88   :  { %v112_v41 = vsel %vm90_vm1, %v85_v34, 0.0  ;;  %v98_v42 = vsel %vm90_vm1, %v83_v35, 0.0 }
  0x89   :  { %v108_v43 = vrot.slane %v107_v38, 2  ;;  %v94_v44 = vrot.slane %v93_v39, 2  ;;  %v113_v45 = vrot.slane %v112_v41, 4  ;;  %v99_v46 = vrot.slane %v98_v42, 4  ;;  %v70_v47 = vpop.permute.xlu1 %69  ;;  %v65_v48 = vpop.permute.xlu0 %64 }
  0x8a   :  { %v87_v49 = vmul.f32 %v282_v36, %v70_v47  ;;  %v86_v50 = vmul.f32 %v281_v37, %v65_v48 }
  0x8b   :  { %v109_v53 = vadd.f32 %v108_v43, %v107_v38  ;;  %v95_v54 = vadd.f32 %v94_v44, %v93_v39  ;;  %v114_v55 = vadd.f32 %v113_v45, %v112_v41  ;;  %v100_v56 = vadd.f32 %v99_v46, %v98_v42  ;;  %v269_v44 = vld [vmem:[%s452_s3] ss:$0 sm:$0xff] }
  0x8c   :  { %v126_v57 = vsel %vm90_vm1, %v87_v49, 0.0  ;;  %v119_v58 = vsel %vm90_vm1, %v86_v50, 0.0 }
  0x8d   :  { %v115_v59 = vrot.slane %v114_v55, 2  ;;  %v101_v60 = vrot.slane %v100_v56, 2  ;;  %v80_v61 = vpop.permute.xlu1 %79  ;;  %v75_v62 = vpop.permute.xlu0 %74  ;;  %v127_v63 = vrot.slane %v126_v57, 4  ;;  %v120_v0 = vrot.slane %v119_v58, 4 }
  0x8e   :  { %v89_v1 = vmul.f32 %v286_v51, %v80_v61  ;;  %v88_v2 = vmul.f32 %v285_v52, %v75_v62  ;;  %v110_v3 = vrot.slane %v109_v53, 1  ;;  %v96_v4 = vrot.slane %v95_v54, 1 }
  0x8f   :  { %v116_v5 = vadd.f32 %v115_v59, %v114_v55  ;;  %v102_v6 = vadd.f32 %v101_v60, %v100_v56  ;;  %v128_v7 = vadd.f32 %v127_v63, %v126_v57  ;;  %v121_v8 = vadd.f32 %v120_v0, %v119_v58 }
  0x90   :  { %v140_v9 = vsel %vm90_vm1, %v89_v1, 0.0  ;;  %v133_v10 = vsel %vm90_vm1, %v88_v2, 0.0  ;;  %v97_v17 = vadd.f32 %v96_v4, %v95_v54  ;;  %v111_v21 = vadd.f32 %v110_v3, %v109_v53 }
  0x91   :  { %v117_v11 = vrot.slane %v116_v5, 1  ;;  %v103_v12 = vrot.slane %v102_v6, 1  ;;  %v141_v13 = vrot.slane %v140_v9, 4  ;;  %v134_v14 = vrot.slane %v133_v10, 4 }
  0x92   :  { %v129_v15 = vrot.slane %v128_v7, 2  ;;  %v122_v16 = vrot.slane %v121_v8, 2 }
  0x93   :  { %v104_v18 = vadd.f32 %v103_v12, %v102_v6  ;;  %v142_v19 = vadd.f32 %v141_v13, %v140_v9  ;;  %v135_v20 = vadd.f32 %v134_v14, %v133_v10  ;;  %v118_v24 = vadd.f32 %v117_v11, %v116_v5 }
  0x94   :  { %v130_v22 = vadd.f32 %v129_v15, %v128_v7  ;;  %v123_v23 = vadd.f32 %v122_v16, %v121_v8 }
  0x95   :  { %v167_v25 = vsel %vm166_vm2, %v104_v18, %v97_v17  ;;  %v143_v26 = vrot.slane %v142_v19, 2  ;;  %v136_v27 = vrot.slane %v135_v20, 2 }
  0x96   :  { %v169_v28 = vsel %vm168_vm3, %v111_v21, %v167_v25  ;;  %v131_v29 = vrot.slane %v130_v22, 1  ;;  %v124_v30 = vrot.slane %v123_v23, 1 }
  0x97   :  { %v144_v31 = vadd.f32 %v143_v26, %v142_v19  ;;  %v137_v32 = vadd.f32 %v136_v27, %v135_v20  ;;  %v171_v33 = vsel %vm170_vm4, %v118_v24, %v169_v28 }
  0x98   :  { %v132_v34 = vadd.f32 %v131_v29, %v130_v22  ;;  %v125_v35 = vadd.f32 %v124_v30, %v123_v23 }
  0x99   :  { %v145_v36 = vrot.slane %v144_v31, 1  ;;  %v138_v37 = vrot.slane %v137_v32, 1 }
  0x9a   :  { %v173_v38 = vsel %vm172_vm5, %v125_v35, %v171_v33 }
  0x9b   :  { %v146_v39 = vadd.f32 %v145_v36, %v144_v31  ;;  %v139_v40 = vadd.f32 %v138_v37, %v137_v32  ;;  %v175_v41 = vsel %vm174_vm6, %v132_v34, %v173_v38 }
  0x9d   :  { %v177_v42 = vsel %vm176_vm7, %v139_v40, %v175_v41 }
  0x9e   :  { %v179_v43 = vsel %vm178_vm8, %v146_v39, %v177_v42 }
  0x9f   :  { %304 = vmatmul.mubr.msk.f32.vlgmr.msra.gmra.mrb[0].mxu0 %vm90_vm1, %v179_v43 }
 0x172   :  { %v248_v45 = vpop.f32.mrb[0].mxu0 }
 0x173   :  { %v249_v46 = vadd.f32 %v269_v44, %v248_v45  ;;  %v305_v47 = vpop.f32.mrb[1].mxu0 }
 0x175   :  { %252 = vst [vmem:[#allocation2] sm:$0xff] %v249_v46 }
 0x176   :  { %257 = vsyncadd [#allocation3], 96  ;;  %s349_s20 = smov [#allocation2]  }
 0x177   :  { %s258_s21 = sshll.u32 %s349_s20, 4  ;;  %s259_s21 = int_to_ptr.vmem [resolvable:$true] %s258_s21 }
 0x178   :  { %s321_s22 = scalar_lea.vmem %s259_s21, 32  ;;  %s325_s23 = scalar_lea.vmem %s259_s21, 128 }
 0x179   :  { %p322_p0 = scmp.ne.s32.totalorder %s259_s21, %s321_s22  ;;  %p326_p1 = scmp.lt.s32.totalorder %s259_s21, %s259_s21 }
 0x17a   :  { %p327_p2 = scmp.lt.s32.totalorder %s325_s23, %s321_s22 }
 0x17c   :  { %p328_p3 = por %p327_p2, %p326_p1 }
 0x17e   :  { %p329_p4 = pnand %p328_p3, %p322_p0 }
 0x180   :  { %332 = shalt.err (!%p329_p4)
}
 0x181   :  { %s333_s3 = scalar_lea.hbm %s453_s4, 32 }
 0x182   :  { %p334_p5 = scmp.ne.s32.totalorder %s453_s4, %s333_s3  ;;  %p337_p6 = scmp.lt.u32.totalorder %s333_s3, %s453_s4 }
 0x184   :  { %p339_p7 = pnand %p337_p6, %p334_p5 }
 0x186   :  { %342 = shalt.err (!%p339_p7)
}
 0x187   :  { %s350_s30 = smov 32   ;;  %s351_s5 = smov 2  }
 0x188   :  { %264 = dma.vmem_to_hbm [thread:$0]  %s259_s21, 32, %s453_s4, [#allocation3], %s350_s30, %s350_s30, %s351_s5  }
 0x189   :  { %343 = dma.done.wait [#allocation3], 128  }
 0x18a   :  { %344 = vsyncadd [#allocation3], 4294967168 }
 0x18b   :  { %268 = vsyncpa [#allocation3], 1 }

</bundles_post_ra>
